<compile_context>
chip_gen: v7x
topology: tpu7x:2x2x1
jax: 0.10.0
libtpu: 0.0.40
codegen_flags: <defaults>
</compile_context>

<pallas_src>
import jax
import jax.numpy as jnp
from jax.experimental import pallas as pl
from jax.experimental.pallas import tpu as pltpu

LANES = 128
SUBLANES = 8


def _choose_tile_rows(batch, feat, vmem_budget_bytes=12 * 1024 * 1024):
    """Rows of 128 lanes per grid step: lane/sublane dense, VMEM-safe on v7x."""
    rows_needed = pl.cdiv(feat, LANES)
    rows_needed = ((rows_needed + SUBLANES - 1) // SUBLANES) * SUBLANES
    per_row_bytes = batch * LANES * 4                     # f32
    # 2 double-buffered input tiles + 1 accumulator tile live in VMEM.
    budget_rows = (vmem_budget_bytes // (3 * per_row_bytes)) // SUBLANES * SUBLANES
    budget_rows = max(SUBLANES, budget_rows)
    return int(min(rows_needed, budget_rows, 2048))


# ----------------------------- Pallas kernel --------------------------------
def _wgan_gp_kernel(scalars_ref, grads_ref, loss_ref, gp_ref, acc_ref):
    # scalars_ref: (2,) f32 in SMEM = [mean(p_fake) - mean(p_real), lmbda]
    # grads_ref:   (B, TILE_R, 128) f32 block of the reshaped gradients
    # acc_ref:     (B, TILE_R, 128) f32 VMEM accumulator (carried across the grid)
    k = pl.program_id(0)

    @pl.when(k == 0)
    def _init():
        acc_ref[...] = jnp.zeros_like(acc_ref)

    # Hot loop: pure VPU multiply-add; no per-tile cross-lane reduction.
    g = grads_ref[...]
    acc_ref[...] += g * g

    @pl.when(k == pl.num_programs(0) - 1)
    def _finalize():
        row_sums = jnp.sum(acc_ref[...], axis=-1)             # (B, TILE_R)
        sumsq = jnp.sum(row_sums, axis=-1, keepdims=True)      # (B, 1) ||g||^2
        norm = jnp.sqrt(sumsq)                                 # (B, 1) ||g||_2
        gp = jnp.mean((norm - 1.0) ** 2)                       # scalar grad penalty
        score_diff = scalars_ref[0]                            # mean(p_fake) - mean(p_real)
        lmbda = scalars_ref[1]
        loss_ref[0, 0] = score_diff + lmbda * gp
        gp_ref[0, 0] = gp


def wasserstein_gp_pallas(p_real, p_fake, grads_flat, lmbda):
    """Compute (loss, grad_penalty) with a tiled, pipelined Pallas kernel."""
    batch, feat = grads_flat.shape

    # Trivial (B,1) score means: hoisted out of the hot loop into the wrapper.
    p_real = p_real.reshape(batch, -1).astype(jnp.float32)
    p_fake = p_fake.reshape(batch, -1).astype(jnp.float32)
    score_diff = jnp.mean(p_fake) - jnp.mean(p_real)
    scalars = jnp.stack(
        [score_diff, jnp.asarray(lmbda, dtype=jnp.float32)]
    ).astype(jnp.float32)                                      # (2,) -> SMEM

    # Lane/sublane-dense layout: pad F with zeros (adds nothing to sum of squares)
    # and reshape each sample to (rows, 128) slabs.
    tile_rows = _choose_tile_rows(batch, feat)
    chunk = tile_rows * LANES
    num_chunks = max(1, pl.cdiv(feat, chunk))
    feat_pad = num_chunks * chunk
    grads = grads_flat.astype(jnp.float32)
    if feat_pad != feat:
        grads = jnp.pad(grads, ((0, 0), (0, feat_pad - feat)))
    grads3 = grads.reshape(batch, feat_pad // LANES, LANES)

    loss, gp = pl.pallas_call(
        _wgan_gp_kernel,
        out_shape=(
            jax.ShapeDtypeStruct((1, 1), jnp.float32),
            jax.ShapeDtypeStruct((1, 1), jnp.float32),
        ),
        grid=(num_chunks,),
        in_specs=[
            pl.BlockSpec(memory_space=pltpu.MemorySpace.SMEM),          # scalars
            pl.BlockSpec((batch, tile_rows, LANES), lambda k: (0, k, 0)),  # grads
        ],
        out_specs=(
            pl.BlockSpec(memory_space=pltpu.MemorySpace.SMEM),
            pl.BlockSpec(memory_space=pltpu.MemorySpace.SMEM),
        ),
        scratch_shapes=[pltpu.VMEM((batch, tile_rows, LANES), jnp.float32)],
        compiler_params=pltpu.CompilerParams(
            dimension_semantics=("arbitrary",),   # reduction axis (carried accumulator)
            vmem_limit_bytes=32 * 1024 * 1024,
        ),
        cost_estimate=pl.CostEstimate(
            flops=2 * batch * feat_pad,
            transcendentals=batch,
            bytes_accessed=batch * feat_pad * 4 + 2 * batch * 4 + 16,
        ),
    )(scalars, grads3)

    return loss[0, 0], gp[0, 0]


# ------------------------- Module-equivalent wrapper -------------------------
class WassersteinGP:
    """JAX/Pallas port of the PyTorch WassersteinGP module.

    torch.autograd.grad(p_interp, interp_x) has no in-kernel Pallas equivalent,
    so the functional JAX version takes `disc_fn` (the discriminator applied to
    interp_x) instead of a pre-computed p_interp tensor and uses jax.vjp.
    """

    def __init__(self, lmbda):
        self.lmbda = lmbda

    def __call__(self, p_real, p_fake, disc_fn, interp_x):
        # TODO(synk): torch.autograd.grad is realized with jax.vjp at the JAX
        # level (glue); the resulting gradients feed the Pallas reduction kernel.
        p_interp, vjp_fn = jax.vjp(disc_fn, interp_x)
        (grads,) = vjp_fn(jnp.ones_like(p_interp))        # grad_outputs = ones
        grads_flat = grads.reshape(grads.shape[0], -1)    # (B, C*T)
        return wasserstein_gp_pallas(p_real, p_fake, grads_flat, self.lmbda)


# --------------------------------- Demo --------------------------------------
if __name__ == "__main__":
    key = jax.random.PRNGKey(0)
    k_real, k_fake, k_eps, k_w = jax.random.split(key, 4)

    B, C, T = 2, 4, 16          # small NCT shapes
    F = C * T
    lmbda = 10.0

    x_real = jax.random.normal(k_real, (B, C, T), dtype=jnp.float32)
    x_fake = jax.random.normal(k_fake, (B, C, T), dtype=jnp.float32)

    # Deterministic synthetic "discriminator": linear over flattened input.
    W = jax.random.normal(k_w, (F, 1), dtype=jnp.float32) * 0.1
    b = jnp.zeros((1,), dtype=jnp.float32)

    def disc_fn(x):
        return x.reshape(x.shape[0], -1) @ W + b          # (B, 1)

    eps = jax.random.uniform(k_eps, (B, 1, 1), dtype=jnp.float32)
    interp_x = eps * x_real + (1.0 - eps) * x_fake

    p_real = disc_fn(x_real)
    p_fake = disc_fn(x_fake)

    loss_fn = WassersteinGP(lmbda)
    loss, grad_penalty = loss_fn(p_real, p_fake, disc_fn, interp_x)
    loss = jax.block_until_ready(loss)
    grad_penalty = jax.block_until_ready(grad_penalty)

    # Pure-JAX reference check.
    p_i, vjp_fn = jax.vjp(disc_fn, interp_x)
    (g_ref,) = vjp_fn(jnp.ones_like(p_i))
    g_ref = g_ref.reshape(B, -1)
    gp_ref = jnp.mean((jnp.linalg.norm(g_ref, axis=1) - 1.0) ** 2)
    loss_ref = jnp.mean(p_fake) - jnp.mean(p_real) + lmbda * gp_ref

    assert jnp.allclose(loss, loss_ref, rtol=1e-5, atol=1e-5), (loss, loss_ref)
    assert jnp.allclose(grad_penalty, gp_ref, rtol=1e-5, atol=1e-5), (grad_penalty, gp_ref)

    print("KERNEL_OK")
</pallas_src>

<mosaic_0001>
module attributes {stable_mosaic.version = 11 : i64} {
  func.func @_wgan_gp_kernel(%arg0: i32, %arg1: memref<2xf32, #tpu.memory_space<smem>>, %arg2: memref<2x8x128xf32, #tpu.memory_space<vmem>>, %arg3: memref<1x1xf32, #tpu.memory_space<smem>>, %arg4: memref<1x1xf32, #tpu.memory_space<smem>>, %arg5: memref<2x8x128xf32, #tpu.memory_space<vmem>>) attributes {dimension_semantics = [#tpu.dimension_semantics<arbitrary>], iteration_bounds = array<i64: 1>, scalar_prefetch = 0 : i64, scratch_operands = 1 : i64, tpu.core_type = #tpu.core_type<tc>, window_params = [{transform_indices = @transform_0, window_bounds = array<i64: 2>}, {transform_indices = @transform_1, window_bounds = array<i64: 2, 8, 128>}, {transform_indices = @transform_2, window_bounds = array<i64: 1, 1>}, {transform_indices = @transform_3, window_bounds = array<i64: 1, 1>}]} {
    %c0_i32 = arith.constant 0 : i32
    %0 = arith.cmpi eq, %arg0, %c0_i32 : i32
    %1 = arith.extui %0 : i1 to i32
    %c0_i32_0 = arith.constant 0 : i32
    %2 = arith.cmpi ne, %1, %c0_i32_0 : i32
    scf.if %2 {
      %cst = arith.constant 0.000000e+00 : f32
      %11 = vector.broadcast %cst : f32 to vector<2x8x128xf32>
      %c0_11 = arith.constant 0 : index
      %c0_12 = arith.constant 0 : index
      %c0_13 = arith.constant 0 : index
      %12 = vector.load %arg5[%c0_11, %c0_12, %c0_13] : memref<2x8x128xf32, #tpu.memory_space<vmem>>, vector<2x8x128xf32>
      tpu.vector_store %arg5[%c0_11, %c0_12, %c0_13], %11 {strides = array<i32>} : memref<2x8x128xf32, #tpu.memory_space<vmem>>, vector<2x8x128xf32>,
    } else {
    }
    %c0 = arith.constant 0 : index
    %c0_1 = arith.constant 0 : index
    %c0_2 = arith.constant 0 : index
    %3 = vector.load %arg2[%c0, %c0_1, %c0_2] : memref<2x8x128xf32, #tpu.memory_space<vmem>>, vector<2x8x128xf32>
    %c0_3 = arith.constant 0 : index
    %c0_4 = arith.constant 0 : index
    %c0_5 = arith.constant 0 : index
    %4 = vector.load %arg5[%c0_3, %c0_4, %c0_5] : memref<2x8x128xf32, #tpu.memory_space<vmem>>, vector<2x8x128xf32>
    %5 = arith.mulf %3, %3 : vector<2x8x128xf32>
    %6 = arith.addf %4, %5 : vector<2x8x128xf32>
    %c0_6 = arith.constant 0 : index
    %c0_7 = arith.constant 0 : index
    %c0_8 = arith.constant 0 : index
    %7 = vector.load %arg5[%c0_6, %c0_7, %c0_8] : memref<2x8x128xf32, #tpu.memory_space<vmem>>, vector<2x8x128xf32>
    tpu.vector_store %arg5[%c0_6, %c0_7, %c0_8], %6 {strides = array<i32>} : memref<2x8x128xf32, #tpu.memory_space<vmem>>, vector<2x8x128xf32>,
    %c0_i32_9 = arith.constant 0 : i32
    %8 = arith.cmpi eq, %arg0, %c0_i32_9 : i32
    %9 = arith.extui %8 : i1 to i32
    %c0_i32_10 = arith.constant 0 : i32
    %10 = arith.cmpi ne, %9, %c0_i32_10 : i32
    scf.if %10 {
      %c0_11 = arith.constant 0 : index
      %c0_12 = arith.constant 0 : index
      %c0_13 = arith.constant 0 : index
      %11 = vector.load %arg5[%c0_11, %c0_12, %c0_13] : memref<2x8x128xf32, #tpu.memory_space<vmem>>, vector<2x8x128xf32>
      %cst = arith.constant dense<0.000000e+00> : vector<2x8xf32>
      %12 = vector.multi_reduction <add>, %11, %cst [2] : vector<2x8x128xf32> to vector<2x8xf32>
      %cst_14 = arith.constant dense<0.000000e+00> : vector<2xf32>
      %13 = vector.multi_reduction <add>, %12, %cst_14 [1] : vector<2x8xf32> to vector<2xf32>
      %14 = vector.shape_cast %13 : vector<2xf32> to vector<2x1xf32>
      %15 = math.sqrt %14 : vector<2x1xf32>
      %cst_15 = arith.constant 1.000000e+00 : f32
      %16 = vector.broadcast %cst_15 : f32 to vector<2x1xf32>
      %17 = arith.subf %15, %16 : vector<2x1xf32>
      %18 = arith.mulf %17, %17 : vector<2x1xf32>
      %19 = vector.shape_cast %18 : vector<2x1xf32> to vector<1x2x1xf32>
      %cst_16 = arith.constant dense<0.000000e+00> : vector<1xf32>
      %20 = vector.multi_reduction <add>, %19, %cst_16 [1, 2] : vector<1x2x1xf32> to vector<1xf32>
      %21 = vector.shape_cast %20 : vector<1xf32> to vector<1x1x1xf32>
      %22 = vector.extract %21[0, 0, 0] : f32 from vector<1x1x1xf32>
      %cst_17 = arith.constant 2.000000e+00 : f32
      %23 = arith.divf %22, %cst_17 : f32
      %c0_18 = arith.constant 0 : index
      %24 = memref.load %arg1[%c0_18] : memref<2xf32, #tpu.memory_space<smem>>
      %c1 = arith.constant 1 : index
      %25 = memref.load %arg1[%c1] : memref<2xf32, #tpu.memory_space<smem>>
      %26 = arith.mulf %25, %23 : f32
      %27 = arith.addf %24, %26 : f32
      %c0_19 = arith.constant 0 : index
      %c0_20 = arith.constant 0 : index
      %28 = memref.load %arg3[%c0_19, %c0_20] : memref<1x1xf32, #tpu.memory_space<smem>>
      memref.store %27, %arg3[%c0_19, %c0_20] : memref<1x1xf32, #tpu.memory_space<smem>>
      %c0_21 = arith.constant 0 : index
      %c0_22 = arith.constant 0 : index
      %29 = memref.load %arg4[%c0_21, %c0_22] : memref<1x1xf32, #tpu.memory_space<smem>>
      memref.store %23, %arg4[%c0_21, %c0_22] : memref<1x1xf32, #tpu.memory_space<smem>>
    } else {
    }
    return
  }
  func.func @transform_0(%arg0: i32) -> i32 {
    %c0_i32 = arith.constant 0 : i32
    %c0_i32_0 = arith.constant 0 : i32
    return %c0_i32 : i32
  }
  func.func @transform_1(%arg0: i32) -> (i32, i32, i32) {
    %c0_i32 = arith.constant 0 : i32
    %c0_i32_0 = arith.constant 0 : i32
    %c0_i32_1 = arith.constant 0 : i32
    return %c0_i32, %arg0, %c0_i32_0 : i32, i32, i32
  }
  func.func @transform_2(%arg0: i32) -> (i32, i32) {
    %c0_i32 = arith.constant 0 : i32
    %c0_i32_0 = arith.constant 0 : i32
    %c0_i32_1 = arith.constant 0 : i32
    return %c0_i32, %c0_i32_0 : i32, i32
  }
  func.func @transform_3(%arg0: i32) -> (i32, i32) {
    %c0_i32 = arith.constant 0 : i32
    %c0_i32_0 = arith.constant 0 : i32
    %c0_i32_1 = arith.constant 0 : i32
    return %c0_i32, %c0_i32_0 : i32, i32
  }
}

</mosaic_0001>

<bundles_post_ra>
// kernel: tpu_custom_call.1
= control target key start
LH: loop header
LB: loop body
LE: loop exit
PB: predicated region body
PF: predicated region fallthrough
CT: control target
= control target key end

     0   :  { %9 = vsyncpa [#allocation5], 0  ;;  %s288_s0 = inlined_call_operand.hbm [shape: f32[2], index: 0, kind: input, shape index: {}]   ;;  %s289_s1 = inlined_call_operand.hbm [shape: f32[2,8,128], index: 1, kind: input, shape index: {}]   ;;  %s290_s2 = inlined_call_operand.hbm [shape: f32[1,1], index: 2, kind: output, shape index: {0}]   ;;  %s291_s3 = inlined_call_operand.hbm [shape: f32[1,1], index: 3, kind: output, shape index: {1}]  }
   0x1   :  { %10 = vsyncpa [#allocation4], 0 }
   0x2   :  { %11 = vsyncpa [#allocation6], 0 }
   0x3   :  { %12 = vsyncpa [#allocation10], 0  ;;  %s154_s14 = scalar_lea.hbm %s288_s0, 16 }
   0x4   :  { %p155_p0 = scmp.ne.s32.totalorder %s288_s0, %s154_s14  ;;  %p158_p1 = scmp.lt.u32.totalorder %s154_s14, %s288_s0 }
   0x6   :  { %p160_p2 = pnand %p158_p1, %p155_p0 }
   0x8   :  { %163 = shalt.err (!%p160_p2)
}
   0x9   :  { %s214_s19 = smov [#allocation3]   ;;  %s215_s22 = smov [#allocation7]  }
   0xa   :  { %20 = dma.hbm_to_smem %s288_s0, 16, %s214_s19, [#allocation5]  }
   0xb   :  { %s26_s23 = sshll.u32 %s215_s22, 4  ;;  %s164_s26 = scalar_lea.hbm %s289_s1, 256  ;;  %s27_s23 = int_to_ptr.vmem [resolvable:$true] %s26_s23 }
   0xc   :  { %p165_p3 = scmp.ne.s32.totalorder %s289_s1, %s164_s26  ;;  %p168_p4 = scmp.lt.u32.totalorder %s164_s26, %s289_s1 }
   0xe   :  { %p170_p5 = pnand %p168_p4, %p165_p3 }
  0x10   :  { %173 = shalt.err (!%p170_p5)
}
  0x11   :  { %s174_s4 = scalar_lea.vmem %s27_s23, 256  ;;  %p179_p7 = scmp.lt.s32.totalorder %s27_s23, %s27_s23 }
  0x12   :  { %p175_p6 = scmp.ne.s32.totalorder %s27_s23, %s174_s4  ;;  %p180_p8 = scmp.lt.s32.totalorder %s174_s4, %s174_s4 }
  0x14   :  { %p181_p9 = por %p180_p8, %p179_p7 }
  0x16   :  { %p182_p10 = pnand %p181_p9, %p175_p6 }
  0x18   :  { %185 = shalt.err (!%p182_p10)
}
  0x19   :  { %s216_s0 = smov 128   ;;  %s217_s5 = smov 8  }
  0x1a   :  { %32 = dma.hbm_to_vmem [thread:$0]  %s289_s1, 256, %s27_s23, [#allocation4], %s216_s0, %s216_s0, %s217_s5  }
  0x1b   :  { %206 = dma.done.wait [#allocation5], 16  }
  0x1c   :  { %207 = vsyncadd [#allocation5], 4294967280 }
  0x1d   :  { %208 = dma.done.wait [#allocation4], 256  }
  0x1e   :  { %209 = vsyncadd [#allocation4], 4294967040 }
  0x1f   :  { %39 = sfence }
  0x20   :  { %v46_v0 = vld [vmem:[#allocation7] sm:$0xff]  ;;  %v47_v1 = vld [vmem:[#allocation7 + $0x8] sm:$0xff]  ;;  %v67_v4 = vlaneseq  ;;  %vm77_vm0 = vcmask 1041409   ;;  %vm80_vm1 = vcmask 58368   ;;  %vm93_vm4 = vcmask 1024   ;;  %s143_s1 = sld [smem:[#allocation3 + $0x1]] }
  0x21   :  { %v50_v2 = vmul.f32 %v46_v0, %v46_v0  ;;  %v51_v3 = vmul.f32 %v47_v1, %v47_v1  ;;  %s107_s8 = sld [smem:[#allocation3]]  ;;  %s186_s14 = scalar_lea.hbm %s291_s3, 16 }
  0x22   :  { %v68_v5 = vand.u32 127, %v67_v4  ;;  %v70_v6 = vshrl.u32 %v67_v4, 7  ;;  %p187_p11 = scmp.ne.s32.totalorder %s291_s3, %s186_s14  ;;  %p190_p12 = scmp.lt.u32.totalorder %s186_s14, %s291_s3 }
  0x23   :  { %61 = vadd.xlane.f32.xlu0 %v50_v2 }
  0x24   :  { %v71_v8 = vsub.s32 %v68_v5, %v70_v6  ;;  %p192_p13 = pnand %p190_p12, %p187_p11 }
  0x27   :  { %63 = vadd.xlane.f32.xlu0 %v51_v3 }
  0xb0   :  { %v62_v7 = vpop.xlane.xlu0 %61 }
  0xb1   :  { %v72_v10 = vrot.slane %v62_v7, %v71_v8 }
  0xb4   :  { %v64_v9 = vpop.xlane.xlu0 %63 }
  0xb5   :  { %v76_v11 = vrot.slane %v64_v9, %v71_v8 }
  0xb7   :  { %v78_v12 = vsel %vm77_vm0, %v76_v11, %v72_v10 }
  0xb8   :  { %v81_v13 = vsel %vm80_vm1, %v78_v12, 0.0 }
  0xb9   :  { %82 = vadd.xlane.f32.xlu1 %v81_v13 }
 0x146   :  { %v83_v14 = vpop.xlane.xlu1 %82 }
 0x147   :  { %152 = vrsqrt.f32 %v83_v14  ;;  %vm86_vm2 = vcmp.eq.f32.partialorder %v83_v14, inf  ;;  %v89_v17 = vand.u32 2147483648, %v83_v14  ;;  %vm88_vm3 = vcmp.eq.f32.partialorder %v83_v14, 0.0 }
 0x151   :  { %v153_v15 = vpop.eup %152 }
 0x152   :  { %v85_v16 = vmul.f32 %v153_v15, %v83_v14 }
 0x154   :  { %v87_v18 = vsel %vm86_vm2, %v83_v14, %v85_v16 }
 0x155   :  { %v90_v19 = vsel %vm88_vm3, %v89_v17, %v87_v18 }
 0x156   :  { %v142_v20 = vadd.f32 -1.0, %v90_v19 }
 0x158   :  { %v92_v21 = vmul.f32 %v142_v20, %v142_v20 }
 0x15a   :  { %v94_v22 = vsel %vm93_vm4, %v92_v21, 0.0 }
 0x15b   :  { %95 = vadd.xlane.f32.xlu1 %v94_v22 }
 0x1e8   :  { %v96_v23 = vpop.xlane.xlu1 %95 }
 0x1e9   :  { %v97_v24 = vrot.slane %v96_v23, 4 }
 0x1eb   :  { %v98_v25 = vadd.f32 %v97_v24, %v96_v23 }
 0x1ed   :  { %v99_v26 = vrot.slane %v98_v25, 2 }
 0x1ef   :  { %v100_v27 = vadd.f32 %v99_v26, %v98_v25 }
 0x1f1   :  { %v101_v28 = vrot.slane %v100_v27, 1 }
 0x1f3   :  { %v102_v29 = vadd.f32 %v101_v28, %v100_v27 }
 0x1f5   :  { %144 = vpush %v102_v29 }
 0x226   :  { %s145_s9 = spop %144 }
 0x227   :  { %s106_s10 = smul.f32 0.5, %s145_s9 }
 0x229   :  { %s109_s11 = smul.f32 %s143_s1, %s106_s10  ;;  %114 = sst [smem:[#allocation9]] %s106_s10 }
 0x22a   :  { %195 = shalt.err (!%p192_p13)
}
 0x22b   :  { %s218_s19 = smov [#allocation9]   ;;  %s110_s22 = sadd.f32 %s109_s11, %s107_s8 }
 0x22c   :  { %130 = dma.smem_to_hbm %s218_s19, 16, %s291_s3, [#allocation10]  }
 0x22d   :  { %112 = sst [smem:[#allocation8]] %s110_s22  ;;  %s196_s25 = scalar_lea.hbm %s290_s2, 16 }
 0x22e   :  { %p197_p0 = scmp.ne.s32.totalorder %s290_s2, %s196_s25  ;;  %p200_p1 = scmp.lt.u32.totalorder %s196_s25, %s290_s2 }
 0x230   :  { %p202_p2 = pnand %p200_p1, %p197_p0 }
 0x232   :  { %205 = shalt.err (!%p202_p2)
}
 0x233   :  { %s219_s30 = smov [#allocation8]  }
 0x234   :  { %122 = dma.smem_to_hbm %s219_s30, 16, %s290_s2, [#allocation6]  }
 0x235   :  { %210 = dma.done.wait [#allocation6], 16  }
 0x236   :  { %211 = vsyncadd [#allocation6], 4294967280 }
 0x237   :  { %212 = dma.done.wait [#allocation10], 16  }
 0x238   :  { %213 = vsyncadd [#allocation10], 4294967280 }
 0x239   :  { %137 = sfence }
 0x23a   :  { %138 = vsyncpa [#allocation4], 1 }
 0x23b   :  { %139 = vsyncpa [#allocation5], 1 }
 0x23c   :  { %140 = vsyncpa [#allocation6], 1 }
 0x23d   :  { %141 = vsyncpa [#allocation10], 1 }

</bundles_post_ra>
